<compile_context>
chip_gen: v6e
topology: v6e:2x2x1
jax: 0.10.0
libtpu: 0.0.40
codegen_flags: <defaults>
</compile_context>

<pallas_src>
import math

import jax
import jax.numpy as jnp
from jax.experimental import pallas as pl
from jax.experimental.pallas import tpu as pltpu

MAX_TOKENS = 8      # stands in for 302
EMBED = 128         # stands in for 1024 (num_heads=1 -> head_dim == EMBED)
INF_DIM = 3
NUM_PAIRS = 5
NUM_LABELS = 2
HIDDEN = 32
FLAT_DIM = NUM_PAIRS * MAX_TOKENS * EMBED   # only the pure-JAX reference uses this
COMPACT_DIM = NUM_PAIRS * EMBED             # kernel-path MLP input width


# ---------------------------------------------------------------------------
# Kernel 1: per-pair attention.  grid=(NUM_PAIRS, B//bt); one (inf, sent) tile
# per step.  Emits one attention row (the final per-pair feature, out-proj
# already folded into the MLP weight) per batch element, stored straight into
# its column slot of the compact (B, NUM_PAIRS*EMBED) MLP input.
# ---------------------------------------------------------------------------
def _attention_kernel(vl_ref, inf_ref, sent_ref, wqf_ref, bqf_ref,
                      wkv_ref, bv_ref, out_ref):
    sent = sent_ref[0]                                  # (bt, S, E) bf16
    bt, S, E = sent.shape

    # q path: inferlayer + q in-projection + 1/sqrt(E) folded into one tiny
    # (3, E) weight at init (exact), computed inline per pair.
    q = jnp.dot(inf_ref[0], wqf_ref[...],
                preferred_element_type=jnp.float32) + bqf_ref[...]      # (bt, E)
    q3 = q[:, None, :]                                                  # (bt, 1, E)

    # Fused K/V projection: one bf16 MXU pass over sent, f32 accumulation.
    # bk is dropped (softmax-invariant); bv is deferred to a single add on ctx.
    kv = jnp.dot(sent.reshape(bt * S, E), wkv_ref[...],
                 preferred_element_type=jnp.float32)                    # (bt*S, 2E)
    k = kv[:, :E].reshape(bt, S, E)
    v = kv[:, E:].reshape(bt, S, E)

    # Scores / softmax / context as batched MXU matmuls (off the VPU/XLU).
    s3 = jnp.einsum("bqe,bke->bqk", q3, k,
                    preferred_element_type=jnp.float32)                 # (bt, 1, S)
    # Key-padding mask: columns >= valid_len never receive attention (needed
    # at production size where 302 tokens are padded to 304).
    col = jax.lax.broadcasted_iota(jnp.int32, s3.shape, 2)
    s3 = jnp.where(col < vl_ref[0], s3, jnp.float32(-1e30))
    s3 = s3 - jnp.max(s3, axis=-1, keepdims=True)
    p3 = jnp.exp(s3)
    inv = pl.reciprocal(jnp.sum(p3, axis=-1, keepdims=True), approx=True)
    ctx = jnp.einsum("bqk,bke->bqe", p3 * inv, v,
                     preferred_element_type=jnp.float32).reshape(bt, E)

    # attn @ (v + bv) == attn @ v + bv.  The out-projection (wo, bo) is folded
    # into the MLP weight at init, so ctx (+bv) is the final per-pair feature.
    out_ref[...] = ctx + bv_ref[...]


def attention_all_pairs(inf_all, sent_all, valid_len, p, *, bt=None):
    """inf_all: (5, B, 3) f32; sent_all: (5, B, S, E) bf16; valid_len: (1,) i32.
    Returns compact concatenated features (B, NUM_PAIRS*EMBED) f32."""
    _, B, S, _ = sent_all.shape
    if bt is None:
        bt = B                       # at production, pick bt so 5*(B//bt) is even (v7x)
    assert B % bt == 0 and (bt == B or bt % 8 == 0)
    nb = B // bt

    def const_spec(shape):
        nd = len(shape)
        # Constant-index operands are DMA'd once; single-buffer them so they
        # don't consume double-buffered VMEM (biggest win on v7x's 64 MiB).
        return pl.BlockSpec(shape, lambda i, j, vl, _n=nd: (0,) * _n,
                            pipeline_mode=pl.Buffered(1))

    grid_spec = pltpu.PrefetchScalarGridSpec(
        num_scalar_prefetch=1,                    # valid key length (padding mask)
        grid=(NUM_PAIRS, nb),
        in_specs=[
            pl.BlockSpec((1, bt, INF_DIM), lambda i, j, vl: (i, j, 0)),
            pl.BlockSpec((1, bt, S, EMBED), lambda i, j, vl: (i, j, 0, 0)),
            const_spec((INF_DIM, EMBED)),         # wqf_t (fused q weight)
            const_spec((1, EMBED)),               # bqf
            const_spec((EMBED, 2 * EMBED)),       # wkv_t (fused K/V weight, bf16)
            const_spec((1, EMBED)),               # bv
        ],
        # Pair i writes its (bt, E) block into column slot i of the
        # (B, NUM_PAIRS*E) MLP input: consumer layout, lane-dense 128 stores.
        out_specs=pl.BlockSpec((bt, EMBED), lambda i, j, vl: (j, i)),
    )
    return pl.pallas_call(
        _attention_kernel,
        out_shape=jax.ShapeDtypeStruct((B, COMPACT_DIM), jnp.float32),
        grid_spec=grid_spec,
        compiler_params=pltpu.CompilerParams(
            dimension_semantics=("parallel", "parallel"),
            # v7x-safe budget.  At production size on v5e/v6e raise this
            # (64-96 MiB; 128 MiB physical) and grow the sent/batch tile.
            vmem_limit_bytes=32 * 1024 * 1024,
        ),
    )(valid_len, inf_all, sent_all, p["wqf_t"], p["bqf"], p["wkv_t"], p["bv"])


# ---------------------------------------------------------------------------
# Kernel 2: hidden Linear (token repetition AND attention out-projection folded
# into the weight at init) + ReLU + out Linear.  K is only NUM_PAIRS*EMBED, so
# no reduction tiling is needed even at production size.
# On single-TC chips (v5e/v6e) this could be fused into kernel 1's epilogue
# with an "arbitrary" pair axis; kept separate so v7x keeps pair parallelism.
# ---------------------------------------------------------------------------
def _mlp_kernel(x_ref, wh_ref, bh_ref, wout_t_ref, bout_ref, o_ref):
    h = jnp.dot(x_ref[...], wh_ref[...],
                preferred_element_type=jnp.float32) + bh_ref[...]
    h = jnp.maximum(h, 0.0)
    o_ref[...] = jnp.dot(h, wout_t_ref[...],
                         preferred_element_type=jnp.float32) + bout_ref[...]


def mlp(x, p):
    B = x.shape[0]
    return pl.pallas_call(
        _mlp_kernel,
        out_shape=jax.ShapeDtypeStruct((B, NUM_LABELS), jnp.float32),
    )(x, p["wh_fused"], p["bh_fused"], p["wout_t"], p["bout"])


# ---------------------------------------------------------------------------
# Full NetC forward.  Callers should supply the stacked bf16 sent tensor
# directly (avoids a wrapper stack/cast HBM round trip of the dominant input).
# ---------------------------------------------------------------------------
def netc_forward(params, inf_all, sent_all, valid_len=None, *, bt=None):
    S = sent_all.shape[2]
    assert S % 8 == 0, "pad key length to a multiple of 8 (e.g. 302 -> 304)"
    if valid_len is None:
        valid_len = S
    vl = jnp.full((1,), valid_len, jnp.int32)
    sent_all = sent_all.astype(jnp.bfloat16)   # no-op if caller already prepped
    x = attention_all_pairs(inf_all, sent_all, vl, params, bt=bt)
    return mlp(x, params)


def netc_forward_pairs(params, xinfs, xsents, valid_len=None):
    """Convenience wrapper matching the PyTorch per-pair call signature."""
    inf_all = jnp.stack(xinfs, axis=0)
    sent_all = jnp.stack([jnp.squeeze(s, axis=1) for s in xsents],
                         axis=0).astype(jnp.bfloat16)
    return netc_forward(params, inf_all, sent_all, valid_len)


# ---------------------------------------------------------------------------
# Pure-JAX reference: literal repeated-query formulation with the FULL hidden
# weight and unfused q / out projections (validates every algebraic fold).
# ---------------------------------------------------------------------------
def netc_reference(p, xinfs, xsents):
    f32 = jnp.float32
    wkv = p["wkv_t"].astype(f32)
    wk_t, wv_t = wkv[:, :EMBED], wkv[:, EMBED:]
    flats = []
    for inf, sent4 in zip(xinfs, xsents):
        sent = jnp.squeeze(sent4, axis=1).astype(jnp.bfloat16).astype(f32)
        q_emb = inf @ p["winf_t"]                                       # (B, E)
        q_rep = jnp.repeat(q_emb[:, None, :], MAX_TOKENS, axis=1)       # (B, MT, E)
        q = q_rep @ p["wq_t"] + p["bq"]
        k = sent @ wk_t + p["bk"]
        v = sent @ wv_t + p["bv"]
        scores = jnp.einsum("bqe,bke->bqk", q, k) / math.sqrt(EMBED)
        attn = jax.nn.softmax(scores, axis=-1)
        ctx = jnp.einsum("bqk,bke->bqe", attn, v)
        out = ctx @ p["wo_t"] + p["bo"]                                 # (B, MT, E)
        flats.append(out.reshape(out.shape[0], -1))
    x = jnp.concatenate(flats, axis=1)
    h = jnp.maximum(x @ p["wh_full_t"] + p["bh"], 0.0)
    return h @ p["wout_t"] + p["bout"]


def init_params(key):
    ks = jax.random.split(key, 12)
    s = 0.02
    f32 = jnp.float32
    winf = jax.random.normal(ks[0], (EMBED, INF_DIM), f32) * s
    wq = jax.random.normal(ks[1], (EMBED, EMBED), f32) * s
    wk = jax.random.normal(ks[2], (EMBED, EMBED), f32) * s
    wv = jax.random.normal(ks[3], (EMBED, EMBED), f32) * s
    bq = jax.random.normal(ks[4], (1, EMBED), f32) * s
    bk = jax.random.normal(ks[5], (1, EMBED), f32) * s
    bv = jax.random.normal(ks[6], (1, EMBED), f32) * s
    wo = jax.random.normal(ks[7], (EMBED, EMBED), f32) * s
    bo = jax.random.normal(ks[8], (1, EMBED), f32) * s
    wh = jax.random.normal(ks[9], (HIDDEN, FLAT_DIM), f32) * s
    bh = jax.random.normal(ks[10], (1, HIDDEN), f32) * s
    wout = jax.random.normal(ks[11], (NUM_LABELS, HIDDEN), f32) * s
    bout = jnp.zeros((1, NUM_LABELS), f32)

    inv_sqrt = 1.0 / math.sqrt(EMBED)
    winf_t, wq_t, wo_t, wh_t = winf.T, wq.T, wo.T, wh.T

    # Fold 1: inferlayer o q-in-projection o attention scale (exact).
    wqf_t = (winf_t @ wq_t) * inv_sqrt                        # (3, E)
    bqf = bq * inv_sqrt
    # Fold 2: fused K/V weight, stored bf16 (dominant bytes at real size).
    wkv_t = jnp.concatenate([wk.T, wv.T], axis=1).astype(jnp.bfloat16)   # (E, 2E)
    # Fold 3: MAX_TOKENS query repetition into the hidden weight (exact).
    wh_folded = wh_t.reshape(NUM_PAIRS, MAX_TOKENS, EMBED, HIDDEN).sum(axis=1)
    # Fold 4: attention out-projection into the hidden weight/bias (exact).
    wh_fused = jnp.einsum("ef,pfh->peh", wo_t, wh_folded).reshape(COMPACT_DIM, HIDDEN)
    bh_fused = bh + jnp.einsum("xe,peh->xh", bo, wh_folded)

    return dict(
        # kernel-path params
        wqf_t=wqf_t, bqf=bqf, wkv_t=wkv_t, bv=bv,
        wh_fused=wh_fused, bh_fused=bh_fused,
        wout_t=wout.T, bout=bout,
        # reference-only (unfused) params
        winf_t=winf_t, wq_t=wq_t, bq=bq, bk=bk,
        wo_t=wo_t, bo=bo, wh_full_t=wh_t, bh=bh,
    )


if __name__ == "__main__":
    B = 2
    S = MAX_TOKENS   # padded sentence (key/value) length; multiple of 8

    root = jax.random.PRNGKey(0)
    pkey, ikey = jax.random.split(root)
    params = init_params(pkey)

    ikeys = jax.random.split(ikey, 2 * NUM_PAIRS)
    xinfs = [jax.random.normal(ikeys[2 * i], (B, INF_DIM), jnp.float32)
             for i in range(NUM_PAIRS)]
    xsents = [jax.random.normal(ikeys[2 * i + 1], (B, 1, S, EMBED), jnp.float32)
              for i in range(NUM_PAIRS)]

    # Production callers hand the kernel stacked bf16 tensors directly; build
    # them once here (host-side prep, outside the jitted forward).
    inf_all = jnp.stack(xinfs, axis=0)                                   # (5, B, 3)
    sent_all = jnp.stack([jnp.squeeze(sv, axis=1) for sv in xsents],
                         axis=0).astype(jnp.bfloat16)                    # (5, B, S, E)

    out = jax.block_until_ready(jax.jit(netc_forward)(params, inf_all, sent_all))
    assert out.shape == (B, NUM_LABELS)

    ref = jax.block_until_ready(netc_reference(params, xinfs, xsents))
    assert jnp.allclose(out, ref, rtol=5e-3, atol=2e-4), (out, ref)

    print("KERNEL_OK")
</pallas_src>

<mosaic_0001>
module attributes {stable_mosaic.version = 11 : i64} {
  func.func @_attention_kernel(%arg0: i32, %arg1: i32, %arg2: memref<1xi32, #tpu.memory_space<smem>>, %arg3: memref<1x2x3xf32, #tpu.memory_space<vmem>>, %arg4: memref<1x2x8x128xbf16, #tpu.memory_space<vmem>>, %arg5: memref<3x128xf32, #tpu.memory_space<vmem>>, %arg6: memref<1x128xf32, #tpu.memory_space<vmem>>, %arg7: memref<128x256xbf16, #tpu.memory_space<vmem>>, %arg8: memref<1x128xf32, #tpu.memory_space<vmem>>, %arg9: memref<2x128xf32, #tpu.memory_space<vmem>>) attributes {dimension_semantics = [#tpu.dimension_semantics<parallel>, #tpu.dimension_semantics<parallel>], iteration_bounds = array<i64: 5, 1>, scalar_prefetch = 1 : i64, scratch_operands = 0 : i64, tpu.core_type = #tpu.core_type<tc>, window_params = [{transform_indices = @transform_0, window_bounds = array<i64: 1, 2, 3>}, {transform_indices = @transform_1, window_bounds = array<i64: 1, 2, 8, 128>}, {pipeline_mode = #tpu.pipeline_mode<synchronous>, transform_indices = @transform_2, window_bounds = array<i64: 3, 128>}, {pipeline_mode = #tpu.pipeline_mode<synchronous>, transform_indices = @transform_3, window_bounds = array<i64: 1, 128>}, {pipeline_mode = #tpu.pipeline_mode<synchronous>, transform_indices = @transform_4, window_bounds = array<i64: 128, 256>}, {pipeline_mode = #tpu.pipeline_mode<synchronous>, transform_indices = @transform_5, window_bounds = array<i64: 1, 128>}, {transform_indices = @transform_6, window_bounds = array<i64: 2, 128>}]} {
    %c0 = arith.constant 0 : index
    %c0_0 = arith.constant 0 : index
    %c0_1 = arith.constant 0 : index
    %c0_2 = arith.constant 0 : index
    %0 = vector.load %arg4[%c0, %c0_0, %c0_1, %c0_2] : memref<1x2x8x128xbf16, #tpu.memory_space<vmem>>, vector<1x2x8x128xbf16>
    %1 = vector.shape_cast %0 : vector<1x2x8x128xbf16> to vector<2x8x128xbf16>
    %c0_3 = arith.constant 0 : index
    %c0_4 = arith.constant 0 : index
    %c0_5 = arith.constant 0 : index
    %2 = vector.load %arg3[%c0_3, %c0_4, %c0_5] : memref<1x2x3xf32, #tpu.memory_space<vmem>>, vector<1x2x3xf32>
    %3 = vector.shape_cast %2 : vector<1x2x3xf32> to vector<2x3xf32>
    %c0_6 = arith.constant 0 : index
    %c0_7 = arith.constant 0 : index
    %4 = vector.load %arg5[%c0_6, %c0_7] : memref<3x128xf32, #tpu.memory_space<vmem>>, vector<3x128xf32>
    %cst = arith.constant dense<0.000000e+00> : vector<2x128xf32>
    %5 = tpu.matmul %3, %4, %cst {dimension_numbers = #tpu.dot_dimension_numbers<[1], [0], [0], [1], [0, 0, 1, 1], [], []>} : vector<2x3xf32>, vector<3x128xf32>, vector<2x128xf32> -> vector<2x128xf32>
    %c0_8 = arith.constant 0 : index
    %c0_9 = arith.constant 0 : index
    %6 = vector.load %arg6[%c0_8, %c0_9] : memref<1x128xf32, #tpu.memory_space<vmem>>, vector<1x128xf32>
    %7 = vector.broadcast %6 : vector<1x128xf32> to vector<2x128xf32>
    %8 = arith.addf %5, %7 : vector<2x128xf32>
    %9 = vector.shape_cast %8 : vector<2x128xf32> to vector<2x1x128xf32>
    %10 = vector.shape_cast %1 : vector<2x8x128xbf16> to vector<16x128xbf16>
    %c0_10 = arith.constant 0 : index
    %c0_11 = arith.constant 0 : index
    %11 = vector.load %arg7[%c0_10, %c0_11] : memref<128x256xbf16, #tpu.memory_space<vmem>>, vector<128x256xbf16>
    %cst_12 = arith.constant dense<0.000000e+00> : vector<16x256xf32>
    %12 = tpu.matmul %10, %11, %cst_12 {dimension_numbers = #tpu.dot_dimension_numbers<[1], [0], [0], [1], [0, 0, 1, 1], [], []>} : vector<16x128xbf16>, vector<128x256xbf16>, vector<16x256xf32> -> vector<16x256xf32>
    %13 = vector.extract_strided_slice %12 {offsets = [0, 0], sizes = [16, 128], strides = [1, 1]} : vector<16x256xf32> to vector<16x128xf32>
    %14 = vector.shape_cast %13 : vector<16x128xf32> to vector<2x8x128xf32>
    %15 = vector.extract_strided_slice %12 {offsets = [0, 128], sizes = [16, 128], strides = [1, 1]} : vector<16x256xf32> to vector<16x128xf32>
    %16 = vector.shape_cast %15 : vector<16x128xf32> to vector<2x8x128xf32>
    "tpu.trace_start"() <{level = 10 : i32, message = "bqe,bke->bqk"}> : () -> ()
    %cst_13 = arith.constant dense<0.000000e+00> : vector<2x1x8xf32>
    %17 = tpu.matmul %9, %14, %cst_13 {dimension_numbers = #tpu.dot_dimension_numbers<[2], [2], [1], [1], [0, 0, 0, 1, 1, 1], [0], [0]>} : vector<2x1x128xf32>, vector<2x8x128xf32>, vector<2x1x8xf32> -> vector<2x1x8xf32>
    "tpu.trace_stop"() : () -> ()
    %18 = tpu.iota {dimensions = array<i32: 2>} : vector<2x1x8xi32>
    %c0_14 = arith.constant 0 : index
    %19 = memref.load %arg2[%c0_14] : memref<1xi32, #tpu.memory_space<smem>>
    %20 = vector.broadcast %19 : i32 to vector<2x1x8xi32>
    %21 = arith.cmpi slt, %18, %20 : vector<2x1x8xi32>
    %cst_15 = arith.constant -1.000000e+30 : f32
    %22 = vector.broadcast %cst_15 : f32 to vector<2x1x8xf32>
    %23 = arith.select %21, %17, %22 : vector<2x1x8xi1>, vector<2x1x8xf32>
    %cst_16 = arith.constant dense<0xFF800000> : vector<2x1xf32>
    %24 = vector.multi_reduction <maximumf>, %23, %cst_16 [2] : vector<2x1x8xf32> to vector<2x1xf32>
    %25 = vector.shape_cast %24 : vector<2x1xf32> to vector<2x1x1xf32>
    %26 = vector.broadcast %25 : vector<2x1x1xf32> to vector<2x1x8xf32>
    %27 = arith.subf %23, %26 : vector<2x1x8xf32>
    %28 = math.exp %27 : vector<2x1x8xf32>
    %cst_17 = arith.constant dense<0.000000e+00> : vector<2x1xf32>
    %29 = vector.multi_reduction <add>, %28, %cst_17 [2] : vector<2x1x8xf32> to vector<2x1xf32>
    %30 = vector.shape_cast %29 : vector<2x1xf32> to vector<2x1x1xf32>
    %31 = tpu.reciprocal %30 {approx = true} : vector<2x1x1xf32> -> vector<2x1x1xf32>
    %32 = vector.broadcast %31 : vector<2x1x1xf32> to vector<2x1x8xf32>
    %33 = arith.mulf %28, %32 : vector<2x1x8xf32>
    "tpu.trace_start"() <{level = 10 : i32, message = "bqk,bke->bqe"}> : () -> ()
    %cst_18 = arith.constant dense<0.000000e+00> : vector<2x1x128xf32>
    %34 = tpu.matmul %33, %16, %cst_18 {dimension_numbers = #tpu.dot_dimension_numbers<[2], [1], [1], [2], [0, 0, 0, 1, 1, 2], [0], [0]>} : vector<2x1x8xf32>, vector<2x8x128xf32>, vector<2x1x128xf32> -> vector<2x1x128xf32>
    "tpu.trace_stop"() : () -> ()
    %35 = vector.shape_cast %34 : vector<2x1x128xf32> to vector<2x128xf32>
    %c0_19 = arith.constant 0 : index
    %c0_20 = arith.constant 0 : index
    %36 = vector.load %arg8[%c0_19, %c0_20] : memref<1x128xf32, #tpu.memory_space<vmem>>, vector<1x128xf32>
    %37 = vector.broadcast %36 : vector<1x128xf32> to vector<2x128xf32>
    %38 = arith.addf %35, %37 : vector<2x128xf32>
    %c0_21 = arith.constant 0 : index
    %c0_22 = arith.constant 0 : index
    %39 = vector.load %arg9[%c0_21, %c0_22] : memref<2x128xf32, #tpu.memory_space<vmem>>, vector<2x128xf32>
    tpu.vector_store %arg9[%c0_21, %c0_22], %38 {strides = array<i32>} : memref<2x128xf32, #tpu.memory_space<vmem>>, vector<2x128xf32>,
    return
  }
  func.func @transform_0(%arg0: i32, %arg1: i32, %arg2: memref<1xi32, #tpu.memory_space<smem>>) -> (i32, i32, i32) {
    %c0_i32 = arith.constant 0 : i32
    %c0_i32_0 = arith.constant 0 : i32
    return %arg0, %arg1, %c0_i32 : i32, i32, i32
  }
  func.func @transform_1(%arg0: i32, %arg1: i32, %arg2: memref<1xi32, #tpu.memory_space<smem>>) -> (i32, i32, i32, i32) {
    %c0_i32 = arith.constant 0 : i32
    %c0_i32_0 = arith.constant 0 : i32
    %c0_i32_1 = arith.constant 0 : i32
    return %arg0, %arg1, %c0_i32, %c0_i32_0 : i32, i32, i32, i32
  }
  func.func @transform_2(%arg0: i32, %arg1: i32, %arg2: memref<1xi32, #tpu.memory_space<smem>>) -> (i32, i32) {
    %c0_i32 = arith.constant 0 : i32
    %c0_i32_0 = arith.constant 0 : i32
    %c0_i32_1 = arith.constant 0 : i32
    return %c0_i32, %c0_i32_0 : i32, i32
  }
  func.func @transform_3(%arg0: i32, %arg1: i32, %arg2: memref<1xi32, #tpu.memory_space<smem>>) -> (i32, i32) {
    %c0_i32 = arith.constant 0 : i32
    %c0_i32_0 = arith.constant 0 : i32
    %c0_i32_1 = arith.constant 0 : i32
    return %c0_i32, %c0_i32_0 : i32, i32
  }
  func.func @transform_4(%arg0: i32, %arg1: i32, %arg2: memref<1xi32, #tpu.memory_space<smem>>) -> (i32, i32) {
    %c0_i32 = arith.constant 0 : i32
    %c0_i32_0 = arith.constant 0 : i32
    %c0_i32_1 = arith.constant 0 : i32
    return %c0_i32, %c0_i32_0 : i32, i32
  }
  func.func @transform_5(%arg0: i32, %arg1: i32, %arg2: memref<1xi32, #tpu.memory_space<smem>>) -> (i32, i32) {
    %c0_i32 = arith.constant 0 : i32
    %c0_i32_0 = arith.constant 0 : i32
    %c0_i32_1 = arith.constant 0 : i32
    return %c0_i32, %c0_i32_0 : i32, i32
  }
  func.func @transform_6(%arg0: i32, %arg1: i32, %arg2: memref<1xi32, #tpu.memory_space<smem>>) -> (i32, i32) {
    %c0_i32 = arith.constant 0 : i32
    return %arg1, %arg0 : i32, i32
  }
}

module attributes {stable_mosaic.version = 11 : i64} {
  func.func @_mlp_kernel(%arg0: memref<2x640xf32, #tpu.memory_space<vmem>>, %arg1: memref<640x32xf32, #tpu.memory_space<vmem>>, %arg2: memref<1x32xf32, #tpu.memory_space<vmem>>, %arg3: memref<32x2xf32, #tpu.memory_space<vmem>>, %arg4: memref<1x2xf32, #tpu.memory_space<vmem>>, %arg5: memref<2x2xf32, #tpu.memory_space<vmem>>) attributes {dimension_semantics = [], scalar_prefetch = 0 : i64, scratch_operands = 0 : i64, tpu.core_type = #tpu.core_type<tc>} {
    %c0 = arith.constant 0 : index
    %c0_0 = arith.constant 0 : index
    %0 = vector.load %arg0[%c0, %c0_0] : memref<2x640xf32, #tpu.memory_space<vmem>>, vector<2x640xf32>
    %c0_1 = arith.constant 0 : index
    %c0_2 = arith.constant 0 : index
    %1 = vector.load %arg1[%c0_1, %c0_2] : memref<640x32xf32, #tpu.memory_space<vmem>>, vector<640x32xf32>
    %cst = arith.constant dense<0.000000e+00> : vector<2x32xf32>
    %2 = tpu.matmul %0, %1, %cst {dimension_numbers = #tpu.dot_dimension_numbers<[1], [0], [0], [1], [0, 0, 1, 1], [], []>} : vector<2x640xf32>, vector<640x32xf32>, vector<2x32xf32> -> vector<2x32xf32>
    %c0_3 = arith.constant 0 : index
    %c0_4 = arith.constant 0 : index
    %3 = vector.load %arg2[%c0_3, %c0_4] : memref<1x32xf32, #tpu.memory_space<vmem>>, vector<1x32xf32>
    %4 = vector.broadcast %3 : vector<1x32xf32> to vector<2x32xf32>
    %5 = arith.addf %2, %4 : vector<2x32xf32>
    %cst_5 = arith.constant 0.000000e+00 : f32
    %6 = vector.broadcast %cst_5 : f32 to vector<2x32xf32>
    %7 = arith.maximumf %5, %6 : vector<2x32xf32>
    %c0_6 = arith.constant 0 : index
    %c0_7 = arith.constant 0 : index
    %8 = vector.load %arg3[%c0_6, %c0_7] : memref<32x2xf32, #tpu.memory_space<vmem>>, vector<32x2xf32>
    %cst_8 = arith.constant dense<0.000000e+00> : vector<2x2xf32>
    %9 = tpu.matmul %7, %8, %cst_8 {dimension_numbers = #tpu.dot_dimension_numbers<[1], [0], [0], [1], [0, 0, 1, 1], [], []>} : vector<2x32xf32>, vector<32x2xf32>, vector<2x2xf32> -> vector<2x2xf32>
    %c0_9 = arith.constant 0 : index
    %c0_10 = arith.constant 0 : index
    %10 = vector.load %arg4[%c0_9, %c0_10] : memref<1x2xf32, #tpu.memory_space<vmem>>, vector<1x2xf32>
    %11 = vector.broadcast %10 : vector<1x2xf32> to vector<2x2xf32>
    %12 = arith.addf %9, %11 : vector<2x2xf32>
    %c0_11 = arith.constant 0 : index
    %c0_12 = arith.constant 0 : index
    %13 = vector.load %arg5[%c0_11, %c0_12] : memref<2x2xf32, #tpu.memory_space<vmem>>, vector<2x2xf32>
    tpu.vector_store %arg5[%c0_11, %c0_12], %12 {strides = array<i32>} : memref<2x2xf32, #tpu.memory_space<vmem>>, vector<2x2xf32>,
    return
  }
}

</mosaic_0001>

<bundles_post_ra>
// kernel: netc_forward.3
= control target key start
LH: loop header
LB: loop body
LE: loop exit
PB: predicated region body
PF: predicated region fallthrough
CT: control target
= control target key end

     0   :  { %v622_v27 = vmov 1983009808   ;;  %v116_v29 = vlaneseq  ;;  %s945_s0 = inlined_call_operand.vmem [shape: f32[2,640], index: 0, kind: input, shape index: {}]   ;;  %s946_s1 = inlined_call_operand.vmem [shape: f32[640,32], index: 1, kind: input, shape index: {}]   ;;  %s947_s2 = inlined_call_operand.vmem [shape: f32[1,32], index: 2, kind: input, shape index: {}]   ;;  %s948_s3 = inlined_call_operand.vmem [shape: f32[32,2], index: 3, kind: input, shape index: {}]   ;;  %s949_s4 = inlined_call_operand.vmem [shape: f32[1,2], index: 4, kind: input, shape index: {}]   ;;  %s950_s5 = inlined_call_operand.hbm [shape: f32[2,2], index: 5, kind: output, shape index: {}]  }
   0x1   :  { %v54_v0 = vld [vmem:[%s946_s1 + $0xf8] sm:$0xff]  ;;  %v53_v2 = vld [vmem:[%s946_s1 + $0xf0] sm:$0xff]  ;;  %v52_v6 = vld [vmem:[%s946_s1 + $0xe8] sm:$0xff]  ;;  %v114_v28 = vunpack.c.l.s4 %v622_v27 }
   0x2   :  { %v38_v1 = vld [vmem:[%s946_s1 + $0x78] sm:$0xff]  ;;  %457 = vmatprep.subr.mxu0 %v54_v0  ;;  %v37_v4 = vld [vmem:[%s946_s1 + $0x70] sm:$0xff]  ;;  %v36_v8 = vld [vmem:[%s946_s1 + $0x68] sm:$0xff]  ;;  %v117_v39 = vshrl.u32 %v116_v29, 7 }
   0x3   :  { %v86_v3 = vld [vmem:[%s946_s1 + $0x1f8] sm:$0xff]  ;;  %458 = vmatpush3.msra.mxu0 %v38_v1  ;;  %v85_v7 = vld [vmem:[%s946_s1 + $0x1f0] sm:$0xff]  ;;  %v84_v10 = vld [vmem:[%s946_s1 + $0x1e8] sm:$0xff]  ;;  %v115_v38 = vunpack.c.0.s8 %v114_v28 }
   0x4   :  { %v70_v5 = vld [vmem:[%s946_s1 + $0x178] sm:$0xff]  ;;  %492 = vmatprep.subr.mxu1 %v86_v3  ;;  %459 = vmatprep.subr.mxu0 %v53_v2  ;;  %v69_v9 = vld [vmem:[%s946_s1 + $0x170] sm:$0xff]  ;;  %v51_v11 = vld [vmem:[%s946_s1 + $0xe0] sm:$0xff] }
   0x5   :  { %493 = vmatpush3.msra.mxu1 %v70_v5  ;;  %460 = vmatpush3.msra.mxu0 %v37_v4  ;;  %v68_v12 = vld [vmem:[%s946_s1 + $0x168] sm:$0xff]  ;;  %v35_v13 = vld [vmem:[%s946_s1 + $0x60] sm:$0xff]  ;;  %v50_v15 = vld [vmem:[%s946_s1 + $0xd8] sm:$0xff]  ;;  %v118_v48 = vsub.s32 %v115_v38, %v117_v39 }
   0x6   :  { %494 = vmatprep.subr.mxu1 %v85_v7  ;;  %461 = vmatprep.subr.mxu0 %v52_v6  ;;  %v83_v14 = vld [vmem:[%s946_s1 + $0x1e0] sm:$0xff]  ;;  %v34_v17 = vld [vmem:[%s946_s1 + $0x58] sm:$0xff]  ;;  %v49_v19 = vld [vmem:[%s946_s1 + $0xd0] sm:$0xff] }
   0x7   :  { %495 = vmatpush3.msra.mxu1 %v69_v9  ;;  %462 = vmatpush3.msra.mxu0 %v36_v8  ;;  %v67_v16 = vld [vmem:[%s946_s1 + $0x160] sm:$0xff]  ;;  %v82_v18 = vld [vmem:[%s946_s1 + $0x1d8] sm:$0xff]  ;;  %v33_v21 = vld [vmem:[%s946_s1 + $0x50] sm:$0xff] }
   0x8   :  { %496 = vmatprep.subr.mxu1 %v84_v10  ;;  %463 = vmatprep.subr.mxu0 %v51_v11  ;;  %v66_v20 = vld [vmem:[%s946_s1 + $0x158] sm:$0xff]  ;;  %v81_v22 = vld [vmem:[%s946_s1 + $0x1d0] sm:$0xff]  ;;  %v48_v23 = vld [vmem:[%s946_s1 + $0xc8] sm:$0xff] }
   0x9   :  { %497 = vmatpush3.msra.mxu1 %v68_v12  ;;  %464 = vmatpush3.msra.mxu0 %v35_v13  ;;  %v65_v24 = vld [vmem:[%s946_s1 + $0x150] sm:$0xff]  ;;  %v32_v25 = vld [vmem:[%s946_s1 + $0x48] sm:$0xff]  ;;  %v47_v30 = vld [vmem:[%s946_s1 + $0xc0] sm:$0xff] }
   0xa   :  { %498 = vmatprep.subr.mxu1 %v83_v14  ;;  %465 = vmatprep.subr.mxu0 %v50_v15  ;;  %v80_v26 = vld [vmem:[%s946_s1 + $0x1c8] sm:$0xff]  ;;  %v31_v32 = vld [vmem:[%s946_s1 + $0x40] sm:$0xff]  ;;  %v46_v34 = vld [vmem:[%s946_s1 + $0xb8] sm:$0xff] }
   0xb   :  { %499 = vmatpush3.msra.mxu1 %v67_v16  ;;  %466 = vmatpush3.msra.mxu0 %v34_v17  ;;  %v64_v31 = vld [vmem:[%s946_s1 + $0x148] sm:$0xff]  ;;  %v79_v33 = vld [vmem:[%s946_s1 + $0x1c0] sm:$0xff]  ;;  %v30_v36 = vld [vmem:[%s946_s1 + $0x38] sm:$0xff] }
   0xc   :  { %500 = vmatprep.subr.mxu1 %v82_v18  ;;  %467 = vmatprep.subr.mxu0 %v49_v19  ;;  %v63_v35 = vld [vmem:[%s946_s1 + $0x140] sm:$0xff]  ;;  %v78_v37 = vld [vmem:[%s946_s1 + $0x1b8] sm:$0xff]  ;;  %v45_v40 = vld [vmem:[%s946_s1 + $0xb0] sm:$0xff] }
   0xd   :  { %501 = vmatpush3.msra.mxu1 %v66_v20  ;;  %468 = vmatpush3.msra.mxu0 %v33_v21  ;;  %v62_v41 = vld [vmem:[%s946_s1 + $0x138] sm:$0xff]  ;;  %v29_v42 = vld [vmem:[%s946_s1 + $0x30] sm:$0xff]  ;;  %v44_v44 = vld [vmem:[%s946_s1 + $0xa8] sm:$0xff] }
   0xe   :  { %502 = vmatprep.subr.mxu1 %v81_v22  ;;  %469 = vmatprep.subr.mxu0 %v48_v23  ;;  %v77_v43 = vld [vmem:[%s946_s1 + $0x1b0] sm:$0xff]  ;;  %v28_v46 = vld [vmem:[%s946_s1 + $0x28] sm:$0xff]  ;;  %v43_v49 = vld [vmem:[%s946_s1 + $0xa0] sm:$0xff] }
   0xf   :  { %503 = vmatpush3.msra.mxu1 %v65_v24  ;;  %470 = vmatpush3.msra.mxu0 %v32_v25  ;;  %v61_v45 = vld [vmem:[%s946_s1 + $0x130] sm:$0xff]  ;;  %v76_v47 = vld [vmem:[%s946_s1 + $0x1a8] sm:$0xff]  ;;  %v21_v51 = vld [vmem:[%s945_s0] sm:$0xff] }
  0x10   :  { %504 = vmatprep.subr.mxu1 %v80_v26  ;;  %471 = vmatprep.subr.mxu0 %v47_v30  ;;  %v60_v50 = vld [vmem:[%s946_s1 + $0x128] sm:$0xff]  ;;  %v27_v52 = vld [vmem:[%s946_s1 + $0x20] sm:$0xff]  ;;  %v42_v54 = vld [vmem:[%s946_s1 + $0x98] sm:$0xff]  ;;  %v119_v58 = vrot.slane %v21_v51, %v118_v48  ;;  %v112_v59 = vcombine.high %v21_v51, %v21_v51 }
  0x11   :  { %505 = vmatpush3.msra.mxu1 %v64_v31  ;;  %472 = vmatpush3.msra.mxu0 %v31_v32  ;;  %v75_v53 = vld [vmem:[%s946_s1 + $0x1a0] sm:$0xff]  ;;  %v26_v56 = vld [vmem:[%s946_s1 + $0x18] sm:$0xff]  ;;  %v41_v60 = vld [vmem:[%s946_s1 + $0x90] sm:$0xff] }
  0x12   :  { %506 = vmatprep.subr.mxu1 %v79_v33  ;;  %473 = vmatprep.subr.mxu0 %v46_v34  ;;  %v59_v55 = vld [vmem:[%s946_s1 + $0x120] sm:$0xff]  ;;  %v74_v57 = vld [vmem:[%s946_s1 + $0x198] sm:$0xff]  ;;  %v25_v62 = vld [vmem:[%s946_s1 + $0x10] sm:$0xff]  ;;  %v127_v4 = vcombine.high %v119_v58, %v119_v58  ;;  %v126_v5 = vrot.slane %v112_v59, %v118_v48 }
  0x13   :  { %507 = vmatpush3.msra.mxu1 %v63_v35  ;;  %474 = vmatpush3.msra.mxu0 %v30_v36  ;;  %v58_v61 = vld [vmem:[%s946_s1 + $0x118] sm:$0xff]  ;;  %v73_v63 = vld [vmem:[%s946_s1 + $0x190] sm:$0xff]  ;;  %v40_v0 = vld [vmem:[%s946_s1 + $0x88] sm:$0xff] }
  0x14   :  { %508 = vmatprep.subr.mxu1 %v78_v37  ;;  %475 = vmatprep.subr.mxu0 %v45_v40  ;;  %v57_v1 = vld [vmem:[%s946_s1 + $0x110] sm:$0xff]  ;;  %v24_v2 = vld [vmem:[%s946_s1 + $0x8] sm:$0xff] }
  0x15   :  { %509 = vmatpush3.msra.mxu1 %v62_v41  ;;  %476 = vmatpush3.msra.mxu0 %v29_v42  ;;  %v72_v3 = vld [vmem:[%s946_s1 + $0x188] sm:$0xff] }
  0x16   :  { %510 = vmatprep.subr.mxu1 %v77_v43  ;;  %477 = vmatprep.subr.mxu0 %v44_v44 }
  0x17   :  { %511 = vmatpush3.msra.mxu1 %v61_v45  ;;  %478 = vmatpush3.msra.mxu0 %v28_v46 }
  0x18   :  { %512 = vmatprep.subr.mxu1 %v76_v47  ;;  %479 = vmatprep.subr.mxu0 %v43_v49 }
  0x19   :  { %513 = vmatpush3.msra.mxu1 %v60_v50  ;;  %480 = vmatpush3.msra.mxu0 %v27_v52 }
  0x1a   :  { %514 = vmatprep.subr.mxu1 %v75_v53  ;;  %481 = vmatprep.subr.mxu0 %v42_v54 }
  0x1b   :  { %515 = vmatpush3.msra.mxu1 %v59_v55  ;;  %482 = vmatpush3.msra.mxu0 %v26_v56 }
  0x1c   :  { %516 = vmatprep.subr.mxu1 %v74_v57  ;;  %483 = vmatprep.subr.mxu0 %v41_v60 }
  0x1d   :  { %517 = vmatpush3.msra.mxu1 %v58_v61 }
  0x1e   :  { %10 = vsyncpa [#allocation3], 0  ;;  %484 = vmatpush3.msra.mxu0 %v25_v62  ;;  %518 = vmatprep.subr.mxu1 %v73_v63  ;;  %v39_v6 = vld [vmem:[%s946_s1 + $0x80] sm:$0xff]  ;;  %v56_v8 = vld [vmem:[%s946_s1 + $0x108] sm:$0xff]  ;;  %v128_v11 = vcombine.high %v126_v5, %v126_v5  ;;  %v623_v13 = vmov 0.0   ;;  %vm624_vm0 = vmmov 0  }
  0x1f   :  { %485 = vmatprep.subr.mxu0 %v40_v0  ;;  %519 = vmatpush3.msra.mxu1 %v57_v1  ;;  %v23_v7 = vld [vmem:[%s946_s1] sm:$0xff]  ;;  %v102_v12 = vld [vmem:[%s946_s1 + $0x278] sm:$0xff]  ;;  %v101_v14 = vld [vmem:[%s946_s1 + $0x270] sm:$0xff]  ;;  %vm363_vm1 = vcmask 261120   ;;  %s625_s16 = smov [#allocation2]   ;;  %vm437_vm2 = vcmask 9216  }
  0x20   :  { %486 = vmatpush3.msra.mxu0 %v24_v2  ;;  %520 = vmatprep.subr.mxu1 %v72_v3  ;;  %v71_v9 = vld [vmem:[%s946_s1 + $0x180] sm:$0xff]  ;;  %v100_v15 = vld [vmem:[%s946_s1 + $0x268] sm:$0xff]  ;;  %v98_v17 = vld [vmem:[%s946_s1 + $0x258] sm:$0xff]  ;;  %s445_s17 = sshll.u32 %s625_s16, 4  ;;  %s446_s17 = int_to_ptr.vmem [resolvable:$true] %s445_s17 }
  0x21   :  { %487 = vmatprep.subr.mxu0 %v39_v6  ;;  %205 = vmatprep.mubr.f32.mxu0 %v127_v4  ;;  %v55_v10 = vld [vmem:[%s946_s1 + $0x100] sm:$0xff]  ;;  %v97_v18 = vld [vmem:[%s946_s1 + $0x250] sm:$0xff]  ;;  %v96_v19 = vld [vmem:[%s946_s1 + $0x248] sm:$0xff]  ;;  %p605_p1 = scmp.lt.s32.totalorder %s446_s17, %s446_s17 }
  0x22   :  { %488 = vmatpush3.msra.mxu0 %v23_v7  ;;  %521 = vmatpush3.msra.mxu1 %v56_v8  ;;  %v99_v16 = vld [vmem:[%s946_s1 + $0x260] sm:$0xff]  ;;  %v94_v21 = vld [vmem:[%s946_s1 + $0x238] sm:$0xff]  ;;  %v93_v22 = vld [vmem:[%s946_s1 + $0x230] sm:$0xff] }
  0x23   :  { %206 = vmatmul.mubr.f32.vlgmr.msra.gmra.mxu0 %v119_v58  ;;  %522 = vmatprep.subr.mxu1 %v71_v9  ;;  %v95_v20 = vld [vmem:[%s946_s1 + $0x240] sm:$0xff]  ;;  %v92_v23 = vld [vmem:[%s946_s1 + $0x228] sm:$0xff]  ;;  %v90_v25 = vld [vmem:[%s946_s1 + $0x218] sm:$0xff] }
  0x24   :  { %549 = vmatprep.subr.mxu0 %v623_v13  ;;  %523 = vmatpush3.msra.mxu1 %v55_v10  ;;  %v91_v24 = vld [vmem:[%s946_s1 + $0x220] sm:$0xff]  ;;  %v89_v26 = vld [vmem:[%s946_s1 + $0x210] sm:$0xff]  ;;  %v88_v27 = vld [vmem:[%s946_s1 + $0x208] sm:$0xff] }
  0x25   :  { %275 = vmatprep.mubr.f32.mxu1 %v128_v11  ;;  %550 = vmatpush3.msra.mxu0 %v102_v12  ;;  %v87_v28 = vld [vmem:[%s946_s1 + $0x200] sm:$0xff]  ;;  %v454_v29 = vld.sshfl [vmem:[%s945_s0 + $0x8] sm:$0x3 pattern:$0x76325410]  ;;  %v355_v30 = vld [vmem:[%s948_s3 + $0x18] sm:$0xff] }
  0x26   :  { %276 = vmatmul.mubr.f32.vlgmr.msra.gmra.mxu1 %v126_v5  ;;  %551 = vmatprep.subr.mxu0 %v623_v13  ;;  %v354_v31 = vld [vmem:[%s948_s3 + $0x10] sm:$0xff]  ;;  %v353_v32 = vld [vmem:[%s948_s3 + $0x8] sm:$0xff]  ;;  %v352_v33 = vld [vmem:[%s948_s3] sm:$0xff] }
  0x27   :  { %552 = vmatpush3.msra.mxu0 %v101_v14  ;;  %581 = vmatprep.mubr.msk.f32.mxu0 %vm624_vm0, %v623_v13  ;;  %v453_v38 = vld [vmem:[%s947_s2] ss:$0 sm:$0xff]  ;;  %s600_s2 = scalar_lea.vmem %s446_s17, 32 }
  0x28   :  { %553 = vmatprep.subr.mxu0 %v623_v13  ;;  %584 = vmatprep.subr.mxu1 %v623_v13  ;;  %v455_v47 = vld [vmem:[%s949_s4] ss:$0 sm:$0xff]  ;;  %p601_p0 = scmp.ne.s32.totalorder %s446_s17, %s600_s2  ;;  %p606_p2 = scmp.lt.s32.totalorder %s600_s2, %s600_s2 }
  0x29   :  { %554 = vmatpush3.msra.mxu0 %v100_v15  ;;  %592 = vmatprep.mubr.msk.f32.mxu1 %vm624_vm0, %v623_v13 }
  0x2a   :  { %555 = vmatprep.subr.mxu0 %v623_v13  ;;  %585 = vmatpush3.msra.mxu1 %v355_v30  ;;  %p607_p3 = por %p606_p2, %p605_p1 }
  0x2b   :  { %556 = vmatpush3.msra.mxu0 %v99_v16  ;;  %586 = vmatprep.subr.mxu1 %v623_v13 }
  0x2c   :  { %557 = vmatprep.subr.mxu0 %v623_v13  ;;  %587 = vmatpush3.msra.mxu1 %v354_v31  ;;  %p608_p4 = pnand %p607_p3, %p601_p0 }
  0x2d   :  { %558 = vmatpush3.msra.mxu0 %v98_v17  ;;  %588 = vmatprep.subr.mxu1 %v623_v13 }
  0x2e   :  { %559 = vmatprep.subr.mxu0 %v623_v13  ;;  %589 = vmatpush3.msra.mxu1 %v353_v32 }
  0x2f   :  { %560 = vmatpush3.msra.mxu0 %v97_v18  ;;  %590 = vmatprep.subr.mxu1 %v623_v13 }
  0x30   :  { %561 = vmatprep.subr.mxu0 %v623_v13  ;;  %591 = vmatpush3.msra.mxu1 %v352_v33 }
  0x31   :  { %562 = vmatpush3.msra.mxu0 %v96_v19 }
  0x32   :  { %563 = vmatprep.subr.mxu0 %v623_v13 }
  0x33   :  { %564 = vmatpush3.msra.mxu0 %v95_v20 }
  0x34   :  { %565 = vmatprep.subr.mxu0 %v623_v13 }
  0x35   :  { %566 = vmatpush3.msra.mxu0 %v94_v21 }
  0x36   :  { %567 = vmatprep.subr.mxu0 %v623_v13 }
  0x37   :  { %568 = vmatpush3.msra.mxu0 %v93_v22 }
  0x38   :  { %569 = vmatprep.subr.mxu0 %v623_v13 }
  0x39   :  { %570 = vmatpush3.msra.mxu0 %v92_v23 }
  0x3a   :  { %571 = vmatprep.subr.mxu0 %v623_v13 }
  0x3b   :  { %572 = vmatpush3.msra.mxu0 %v91_v24 }
  0x3c   :  { %573 = vmatprep.subr.mxu0 %v623_v13 }
  0x3d   :  { %574 = vmatpush3.msra.mxu0 %v90_v25 }
  0x3e   :  { %575 = vmatprep.subr.mxu0 %v623_v13 }
  0x3f   :  { %576 = vmatpush3.msra.mxu0 %v89_v26 }
  0x40   :  { %577 = vmatprep.subr.mxu0 %v623_v13 }
  0x41   :  { %578 = vmatpush3.msra.mxu0 %v88_v27 }
  0x42   :  { %579 = vmatprep.subr.mxu0 %v623_v13 }
  0x43   :  { %580 = vmatpush3.msra.mxu0 %v87_v28 }
  0x44   :  { %582 = vmatmul.mubr.f32.vlgmr.msra.gmra.mxu0 %v454_v29 }
  0xe3   :  { %v489_v34 = vpop.f32.mrf.mxu0 }
  0xe5   :  { %v490_v35 = vpop.f32.mrf.mxu0 }
  0xe6   :  { %v524_v36 = vpop.f32.mrf.mxu1  ;;  %v491_v37 = vadd.f32 %v490_v35, %v489_v34 }
  0xe8   :  { %v525_v39 = vpop.f32.mrf.mxu1  ;;  %v208_v40 = vadd.f32 %v491_v37, %v453_v38 }
  0xe9   :  { %v526_v41 = vadd.f32 %v525_v39, %v524_v36 }
  0xeb   :  { %v278_v42 = vadd.f32 %v526_v41, %v208_v40 }
 0x104   :  { %v347_v43 = vpop.f32.mrf.mxu0 }
 0x105   :  { %v348_v44 = vadd.f32 %v347_v43, %v278_v42 }
 0x106   :  { %v583_v45 = vpop.f32.mrf.mxu0 }
 0x107   :  { %v351_v46 = vmax.f32 %v348_v44, 0.0 }
 0x109   :  { %593 = vmatmul.mubr.msk.f32.vlgmr.msra.gmra.mxu1 %vm363_vm1, %v351_v46 }
 0x1c9   :  { %v433_v48 = vpop.f32.mrf.mxu1 }
 0x1ca   :  { %v434_v49 = vadd.f32 %v455_v47, %v433_v48 }
 0x1cb   :  { %v594_v50 = vpop.f32.mrf.mxu1 }
 0x1cc   :  { %438 = vst.msk [vmem:[#allocation2] sm:$0x3] %vm437_vm2, %v434_v49 }
 0x1cd   :  { %611 = shalt.err (!%p608_p4)
}
 0x1ce   :  { %448 = dma.vmem_to_hbm [thread:$0]  %s446_s17, 32, %s950_s5, [#allocation3]  }
 0x1cf   :  { %620 = dma.done.wait [#allocation3], 32  }
 0x1d0   :  { %621 = vsyncadd [#allocation3], 4294967264 }
 0x1d1   :  { %452 = vsyncpa [#allocation3], 1 }

// kernel: netc_forward.2
= control target key start
LH: loop header
LB: loop body
LE: loop exit
PB: predicated region body
PF: predicated region fallthrough
CT: control target
= control target key end

     0   :  { %s1712_s0 = inlined_call_operand.<no memory space> [shape: s32[1], index: 0, kind: input, shape index: {}]   ;;  %s1713_s1 = inlined_call_operand.vmem [shape: f32[5,2,3], index: 1, kind: input, shape index: {}]   ;;  %s1714_s2 = inlined_call_operand.hbm [shape: bf16[5,2,8,128], index: 2, kind: input, shape index: {}]   ;;  %s1715_s3 = inlined_call_operand.vmem [shape: f32[3,128], index: 3, kind: input, shape index: {}]   ;;  %s1716_s4 = inlined_call_operand.hbm [shape: f32[1,128], index: 4, kind: input, shape index: {}]   ;;  %s1717_s5 = inlined_call_operand.hbm [shape: bf16[128,256], index: 5, kind: input, shape index: {}]   ;;  %s1718_s6 = inlined_call_operand.hbm [shape: f32[1,128], index: 6, kind: input, shape index: {}]   ;;  %s1719_s7 = inlined_call_operand.vmem [shape: f32[2,640], index: 7, kind: output, shape index: {}]  }
   0x1   :  { %12 = sst [smem:[#allocation3]] %s1712_s0 }
   0x2   :  { %13 = vsyncpa [#allocation5], 0 }
   0x3   :  { %15 = vsyncpa [#allocation5 + $0x1], 0 }
   0x4   :  { %16 = vsyncpa [#allocation7], 0 }
   0x5   :  { %17 = vsyncpa [#allocation10], 0  ;;  %s1522_s26 = smov 0   ;;  %s1524_s27 = smov 0  }
   0x6   :  { %s1526_s28 = smov 0   ;;  %s1528_s29 = smov 0  }
   0x7   :  { %s1530_s30 = smov 0   ;;  %s1532_s8 = smov 0  }
   0x8 LB: > { %s1096_s0 = sadd.s32 4294967295, %s1465_s8   ;;  %p85_p0 = scmp.ne.s32.totalorder %s1449_s27, %s1445_s26  ;;  %s1465_s8 = sphi %s1532_s8, %s23_s8   ;;  %s1461_s30 = sphi %s1530_s30, %s1729_s30   ;;  %s1457_s29 = sphi %s1528_s29, %s1728_s29   ;;  %s1453_s28 = sphi %s1526_s28, %s1727_s28   ;;  %s1449_s27 = sphi %s1524_s27, %s1726_s27   ;;  %s1445_s26 = sphi %s1522_s26, %s1725_s26  }
   0x9   : > { %p1552_p1 = scmp.eq.s32.totalorder %s1096_s0, 0  ;;  %p1098_p2 = scmp.ge.s32.totalorder %s1465_s8, 1 }
   0xa   : > { %p208_p3 = scmp.lt.s32.totalorder %s1465_s8, 6  ;;  %s1467_s12 = smov [#allocation6]  }
   0xb   : > { %p1560_p4 = por %p1552_p1, %p85_p0  ;;  %s224_s13 = sshll.u32 %s1467_s12, 4  ;;  %s225_s13 = int_to_ptr.vmem [resolvable:$true] %s224_s13 }
   0xc   : > { %p1564_p5 = pnand %p1098_p2, %p208_p3  ;;  %s1468_s14 = smov [#allocation8]  }
   0xd   : > { %s234_s15 = sshll.u32 %s1468_s14, 4  ;;  %s1469_s17 = smov [#allocation9]   ;;  %s1576_s15 = int_to_ptr.vmem [resolvable:$true] %s234_s15 }
   0xe   : > { %p1188_p6 = pneg %p1564_p5  ;;  %s248_s18 = sshll.u32 %s1469_s17, 4  ;;  %s249_s18 = int_to_ptr.vmem [resolvable:$true] %s248_s18 }
   0xf   : > { %s1312_s19 = scalar_lea.vmem %s225_s13, 16  ;;  %s1319_s20 = scalar_lea.vmem %s225_s13, 32 }
  0x10   : > { %p1572_p7 = pnand %p1188_p6, %p1552_p1  ;;  %p1313_p9 = scmp.ne.s32.totalorder %s225_s13, %s1312_s19 }
  0x11   : > { %p1320_p12 = scmp.lt.s32.totalorder %s225_s13, %s225_s13  ;;  %p1321_p13 = scmp.lt.s32.totalorder %s1319_s20, %s1312_s19 }
  0x12   : > { %p1303_p8 = pneg %p1572_p7 }
  0x13   : > { %p1322_p0 = por %p1321_p13, %p1320_p12 }
  0x14   : > { %p1315_p10 = pnand %p1313_p9, %p1303_p8 }
  0x16   : > { %p1316_p11 = pneg %p1315_p10 }
  0x18   : > { %p1323_p2 = pnand %p1322_p0, %p1316_p11 }
  0x1a   : > { %1326 = shalt.err (!%p1323_p2)
}
  0x1b   : > { %1191 = dma.hbm_to_vmem [thread:$0]  (!%p1572_p7), %s1716_s4, 16, %s225_s13, [#allocation7]  }
  0x1c   : > { %s1338_s23 = scalar_lea.vmem %s1576_s15, 2048  ;;  %p1346_p10 = scmp.lt.s32.totalorder %s1576_s15, %s1576_s15 }
  0x1d   : > { %p1339_p3 = scmp.ne.s32.totalorder %s1576_s15, %s1338_s23  ;;  %p1347_p11 = scmp.lt.s32.totalorder %s1338_s23, %s1338_s23 }
  0x1f   : > { %p1341_p6 = pnand %p1339_p3, %p1303_p8  ;;  %p1348_p12 = por %p1347_p11, %p1346_p10 }
  0x21   : > { %p1342_p9 = pneg %p1341_p6 }
  0x23   : > { %p1349_p13 = pnand %p1348_p12, %p1342_p9 }
  0x25   : > { %1352 = shalt.err (!%p1349_p13)
}
  0x26   : > { %s1470_s24 = smov 128   ;;  %s1471_s25 = smov 8  }
  0x27   : > { %1194 = dma.hbm_to_vmem [thread:$0]  (!%p1572_p7), %s1717_s5, 2048, %s1576_s15, [#allocation7], %s1470_s24, %s1470_s24, %s1471_s25  }
  0x28   : > { %s1364_s12 = scalar_lea.vmem %s249_s18, 16  ;;  %s1371_s13 = scalar_lea.vmem %s249_s18, 32 }
  0x29   : > { %p1365_p0 = scmp.ne.s32.totalorder %s249_s18, %s1364_s12  ;;  %p1372_p6 = scmp.lt.s32.totalorder %s249_s18, %s249_s18 }
  0x2a   : > { %p1373_p9 = scmp.lt.s32.totalorder %s1371_s13, %s1364_s12 }
  0x2b   : > { %p1367_p2 = pnand %p1365_p0, %p1303_p8 }
  0x2c   : > { %p1374_p10 = por %p1373_p9, %p1372_p6 }
  0x2d   : > { %p1368_p3 = pneg %p1367_p2 }
  0x2f   : > { %p1375_p11 = pnand %p1374_p10, %p1368_p3 }
  0x31   : > { %1378 = shalt.err (!%p1375_p11)
}
  0x32   : > { %1197 = dma.hbm_to_vmem [thread:$0]  (!%p1572_p7), %s1718_s6, 16, %s249_s18, [#allocation10]  }
  0x33   : > { %s72_s15 = sadd.s32 1, %s1453_s28  ;;  %s35_s19 = sadd.s32 1, %s1461_s30 }
  0x34   : > { %p79_p8 = scmp.ne.s32.totalorder %s1453_s28, %s1449_s27  ;;  %p37_p12 = scmp.ge.s32.totalorder %s35_s19, 5 }
  0x35   : > { %p80_p13 = scmp.eq.s32.totalorder %s1465_s8, 0  ;;  %p1205_p0 = scmp.lt.s32.totalorder %s1465_s8, 5 }
  0x36   : > { %s269_s16 = sand.u32 1, %s1453_s28   ;;  %s1731_s19 = smov (%p37_p12, %s35_s19), 0 }
  0x37   : > { %p81_p2 = por %p80_p13, %p79_p8  ;;  %s67_s20 = ssub.s32 %s1461_s30, %s1731_s19 }
  0x38   : > { %s1103_s21 = sshll.u32 %s269_s16, 3  ;;  %p70_p3 = scmp.eq.s32.totalorder %s67_s20, 0 }
  0x39   : > { %s1138_s22 = sshll.u32 %s1461_s30, 7  ;;  %s273_s23 = scalar_lea.vmem [#allocation4], %s1103_s21 }
  0x3a   : > { %s282_s24 = sshll.u32 %s273_s23, 4  ;;  %s281_s0 = scalar_lea.hbm %s1714_s2, %s1138_s22  ;;  %s283_s24 = int_to_ptr.vmem [resolvable:$true] %s282_s24 }
  0x3b   : > { %s1622_s18 = scalar_select %p70_p3, %s1453_s28, %s72_s15  }
  0x3c   : > { %p1629_p7 = pnand %p1205_p0, %p81_p2  ;;  %s270_s13 = scalar_lea.sflag [#allocation5], %s269_s16 }
  0x3d   : > { %s1392_s14 = scalar_lea.vmem %s283_s24, 128  ;;  %s1472_s17 = smov [#allocation4]  }
  0x3e   : > { %p1381_p6 = pneg %p1629_p7  ;;  %p1393_p9 = scmp.ne.s32.totalorder %s283_s24, %s1392_s14 }
  0x3f   : > { %s1397_s15 = sshll.u32 %s1472_s17, 4  ;;  %s1398_s15 = int_to_ptr.vmem [resolvable:$false] %s1397_s15 }
  0x40   : > { %p1395_p10 = pnand %p1393_p9, %p1381_p6  ;;  %s1399_s20 = scalar_lea.vmem %s1398_s15, 256 }
  0x41   : > { %p1400_p8 = scmp.lt.s32.totalorder %s283_s24, %s1398_s15  ;;  %p1401_p12 = scmp.lt.s32.totalorder %s1399_s20, %s1392_s14 }
  0x42   : > { %p1396_p11 = pneg %p1395_p10 }
  0x43   : > { %p1402_p13 = por %p1401_p12, %p1400_p8 }
  0x45   : > { %p1403_p3 = pnand %p1402_p13, %p1396_p11 }
  0x47   : > { %1406 = shalt.err (!%p1403_p3)
}
  0x48   : > { %s1473_s21 = smov 64   ;;  %s1474_s22 = smov 4  }
  0x49   : > { %1201 = dma.hbm_to_vmem [thread:$0]  (!%p1629_p7), %s281_s0, 128, %s283_s24, %s270_s13, %s1473_s21, %s1473_s21, %s1474_s22  }
  0x4a   : > { %294 = sbr.rel (%p1564_p5) target bundleno = 1023 (0x3ff), region = 44  ;;  %s296_s16 = sand.u32 (!%p1564_p5), 1, %s1449_s27  }
  0x4b   : > { %s1640_s23 = sshll.u32 (!%p1564_p5), %s296_s16, 3  ;;  %s297_s25 = scalar_lea.sflag (!%p1564_p5), [#allocation5], %s296_s16 }
  0x4c   : > { %s300_s26 = scalar_lea.vmem (!%p1564_p5), [#allocation4], %s1640_s23 }
  0x4f   : > { %1432 = dma.done.wait (%p1560_p4), %s297_s25, 128  }
  0x50   : > { %1434 = vsyncadd (%p1560_p4), %s297_s25, 4294967168 }
  0x51   : > { %1436 = dma.done.wait (%p1552_p1), [#allocation7], 2064  }
  0x52   : > { %1438 = vsyncadd (%p1552_p1), [#allocation7], 4294965232 }
  0x53   : > { %1440 = dma.done.wait (%p1552_p1), [#allocation10], 16  }
  0x54   : > { %1442 = vsyncadd (%p1552_p1), [#allocation10], 4294967280  ;;  %v1475_v0 = vmov 0.0   ;;  %vm1476_vm0 = vmmov 0   ;;  %p351_p4 = scmp.lt.s32.totalorder %s1457_s29, 4  ;;  %v1477_v1 = vmov 0   ;;  %v461_v25 = vlaneseq }
  0x55   : > { %1149 = vmatprep.subr.mxu0 %v1475_v0  ;;  %1151 = vmatprep.mubr.msk.f32.mxu0 %vm1476_vm0, %v1475_v0  ;;  %v1268_v2 = vld [vmem:[#allocation8 + $0x74] ss:$8 sps:$4 sm:$0xff]   ;;  %v1270_v3 = vld [vmem:[#allocation8 + $0x70] ss:$8 sps:$4 sm:$0xff]   ;;  %v1271_v4 = vld [vmem:[#allocation8 + $0x64] ss:$8 sps:$4 sm:$0xff]  }
  0x56   : > { %616 = vmatprep.mubr.bf16.mxu1 %v1477_v1  ;;  %s1733_s29 = smov (!%p351_p4, %s1457_s29), 4  ;;  %584 = vmatprep.subr.bf16.mxu1 %v1268_v2  ;;  %v1273_v5 = vld [vmem:[#allocation8 + $0x60] ss:$8 sps:$4 sm:$0xff]   ;;  %v1274_v6 = vld [vmem:[#allocation8 + $0x54] ss:$8 sps:$4 sm:$0xff]   ;;  %vm383_vm1 = vcmask 1042432  }
  0x57   : > { %585 = vmatpush1.bf16.msra.mxu1 %v1270_v3  ;;  %s1111_s9 = sshll.u32 %s1733_s29, 1  ;;  %v1276_v7 = vld [vmem:[#allocation8 + $0x50] ss:$8 sps:$4 sm:$0xff]   ;;  %v1277_v8 = vld [vmem:[#allocation8 + $0x44] ss:$8 sps:$4 sm:$0xff]   ;;  %vm379_vm2 = vcmask 23552  }
  0x58   : > { %586 = vmatprep.subr.bf16.mxu1 %v1271_v4  ;;  %s357_s24 = scalar_lea.vmem %s1713_s1, %s1111_s9  ;;  %v371_v9 = vld [vmem:[%s1715_s3] sm:$0x7]  ;;  %v1279_v11 = vld [vmem:[#allocation8 + $0x40] ss:$8 sps:$4 sm:$0xff]   ;;  %v1280_v12 = vld [vmem:[#allocation8 + $0x34] ss:$8 sps:$4 sm:$0xff]   ;;  %s366_s15 = scalar_lea.vmem %s1719_s7, %s1111_s9 }
  0x59   : > { %v370_v10 = vld [vmem:[%s357_s24] sm:$0x3]  ;;  %1150 = vmatpush3.msk.msra.mxu0 %vm383_vm1, %v371_v9  ;;  %v1282_v13 = vld [vmem:[#allocation8 + $0x30] ss:$8 sps:$4 sm:$0xff]   ;;  %v1285_v15 = vld [vmem:[#allocation8 + $0x20] ss:$8 sps:$4 sm:$0xff]  }
  0x5a   : > { %1152 = vmatmul.mubr.msk.f32.vlgmr.msra.gmra.mxu0 %vm379_vm2, %v370_v10  ;;  %1154 = vmatprep.subr.mxu0 %v1475_v0  ;;  %v1283_v14 = vld [vmem:[#allocation8 + $0x24] ss:$8 sps:$4 sm:$0xff]   ;;  %v1286_v16 = vld [vmem:[#allocation8 + $0x14] ss:$8 sps:$4 sm:$0xff]   ;;  %v1288_v17 = vld [vmem:[#allocation8 + $0x10] ss:$8 sps:$4 sm:$0xff]  }
  0x5b   : > { %587 = vmatpush1.bf16.msra.mxu1 %v1273_v5  ;;  %1156 = vmatprep.mubr.msk.f32.mxu0 %vm1476_vm0, %v1475_v0  ;;  %v1289_v18 = vld [vmem:[#allocation8 + $0x4] ss:$8 sps:$4 sm:$0xff]   ;;  %v1291_v19 = vld [vmem:[#allocation8] ss:$8 sps:$4 sm:$0xff]   ;;  %v1478_v23 = vmov 1966171168  }
  0x5c   : > { %588 = vmatprep.subr.bf16.mxu1 %v1274_v6  ;;  %v1292_v20 = vld [vmem:[%s300_s26] sm:$0xff]   ;;  %v459_v24 = vunpack.c.l.s4 %v1478_v23  ;;  %v462_v27 = vshrl.u32 %v461_v25, 7  ;;  %v1113_v28 = vld [vmem:[#allocation6] ss:$0 sm:$0xff]  ;;  %s769_s13 = sld [smem:[#allocation3]]  ;;  %v768_v38 = vand.u32 127, %v461_v25 }
  0x5d   : > { %vm774_vm4 = vcmask 57344   ;;  %vm797_vm5 = vcmask 64512   ;;  %v1135_v4 = vld [vmem:[#allocation9] ss:$0 sm:$0xff]  ;;  %vm956_vm6 = vcmask 1041409  }
  0x5e   : > { %v460_v26 = vunpack.c.0.s8 %v459_v24 }
  0x5f   : > { %589 = vmatpush1.bf16.msra.mxu1 %v1276_v7 }
  0x60   : > { %590 = vmatprep.subr.bf16.mxu1 %v1277_v8  ;;  %v463_v30 = vsub.s32 %v460_v26, %v462_v27 }
  0x62   : > { %v770_v39 = vstv %s769_s13 }
  0x63   : > { %591 = vmatpush1.bf16.msra.mxu1 %v1279_v11  ;;  %vm771_vm3 = vcmp.lt.s32.totalorder %v768_v38, %v770_v39 }
  0x64   : > { %592 = vmatprep.subr.bf16.mxu1 %v1280_v12 }
  0x67   : > { %593 = vmatpush1.bf16.msra.mxu1 %v1282_v13 }
  0x68   : > { %594 = vmatprep.subr.bf16.mxu1 %v1283_v14 }
  0x6b   : > { %595 = vmatpush1.bf16.msra.mxu1 %v1285_v15 }
  0x6c   : > { %596 = vmatprep.subr.bf16.mxu1 %v1286_v16 }
  0x6f   : > { %597 = vmatpush1.bf16.msra.mxu1 %v1288_v17 }
  0x70   : > { %598 = vmatprep.subr.bf16.mxu1 %v1289_v18 }
  0x73   : > { %599 = vmatpush1.bf16.msra.mxu1 %v1291_v19 }
  0x76   : > { %617 = vmatmul.mubr.bf16.vlgmr.msra.gmra.mxu1 %v1292_v20 }
 0x11a   : > { %v453_v21 = vpop.f32.mrf.mxu0 }
 0x11b   : > { %v454_v29 = vadd.f32 %v1113_v28, %v453_v21 }
 0x11c   : > { %v1153_v22 = vpop.f32.mrf.mxu0 }
 0x11d   : > { %v464_v31 = vrot.slane %v454_v29, %v463_v30 }
 0x11f   : > { %v472_v32 = vrot.slane %v464_v31, %v463_v30  ;;  %v465_v34 = vcombine.high %v464_v31, %v464_v31 }
 0x121   : > { %v479_v37 = vrot.slane %v465_v34, %v463_v30 }
 0x136   : > { %v618_v33 = vpop.f32.mrf.mxu1 }
 0x137   : > { %1155 = vmatpush3.xpose.msra.mxu0 %v618_v33 }
 0x138   : > { %v620_v35 = vpop.f32.mrf.mxu1  ;;  %1159 = vmatprep.subr.mxu0 %v1475_v0 }
 0x13a   : > { %v622_v36 = vpop.f32.mrf.mxu1  ;;  %1157 = vmatmul.mubr.f32.vlgmr.msra.gmra.mxu0 %v472_v32 }
 0x13b   : > { %1160 = vmatpush3.xpose.msra.mxu0 %v622_v36  ;;  %1161 = vmatprep.mubr.msk.f32.mxu0 %vm1476_vm0, %v1475_v0 }
 0x13c   : > { %1164 = vmatprep.subr.mxu0 %v1475_v0  ;;  %v624_v62 = vpop.f32.mrf.mxu1 }
 0x13e   : > { %1162 = vmatmul.mubr.f32.vlgmr.msra.gmra.mxu0 %v479_v37 }
 0x13f   : > { %1165 = vmatpush3.msra.mxu0 %v620_v35  ;;  %1166 = vmatprep.mubr.msk.f32.mxu0 %vm1476_vm0, %v1475_v0 }
 0x140   : > { %1169 = vmatprep.subr.mxu0 %v1475_v0 }
 0x1fa   : > { %v693_v40 = vpop.f32.mrf.mxu0 }
 0x1fb   : > { %v772_v41 = vsel %vm771_vm3, %v693_v40, -1e+30 }
 0x1fc   : > { %v1158_v42 = vpop.f32.mrf.mxu0  ;;  %v775_v43 = vsel %vm774_vm4, %v772_v41, -inf }
 0x1fd   : > { %776 = vmax.xlane.f32.xlu0 %v775_v43 }
 0x1fe   : > { %v763_v44 = vpop.f32.mrf.mxu0 }
 0x1ff   : > { %v773_v45 = vsel %vm771_vm3, %v763_v44, -1e+30 }
 0x200   : > { %v1163_v46 = vpop.f32.mrf.mxu0  ;;  %v778_v47 = vsel %vm774_vm4, %v773_v45, -inf }
 0x201   : > { %779 = vmax.xlane.f32.xlu0 %v778_v47 }
 0x286   : > { %v777_v48 = vpop.xlane.xlu0 %776 }
 0x287   : > { %v781_v49 = vsub.f32 %v772_v41, %v777_v48 }
 0x289   : > { %v783_v50 = vmul.f32 1.442695, %v781_v49 }
 0x28a   : > { %v780_v51 = vpop.xlane.xlu0 %779 }
 0x28b   : > { %1293 = vpow2.f32 %v783_v50  ;;  %v782_v52 = vsub.f32 %v773_v45, %v780_v51 }
 0x28d   : > { %v785_v53 = vmul.f32 1.442695, %v782_v52 }
 0x28f   : > { %1295 = vpow2.f32 %v785_v53 }
 0x298   : > { %v1294_v54 = vpop.eup %1293 }
 0x299   : > { %v787_v55 = vsel %vm774_vm4, %v1294_v54, 0.0 }
 0x29a   : > { %788 = vadd.xlane.f32.xlu1 %v787_v55 }
 0x29c   : > { %v1296_v56 = vpop.eup %1295 }
 0x29d   : > { %v790_v57 = vsel %vm774_vm4, %v1296_v56, 0.0 }
 0x29e   : > { %791 = vadd.xlane.f32.xlu1 %v790_v57 }
 0x323   : > { %v789_v58 = vpop.xlane.xlu1 %788 }
 0x324   : > { %1297 = vrcp.f32 %v789_v58 }
 0x327   : > { %v792_v59 = vpop.xlane.xlu1 %791 }
 0x328   : > { %1299 = vrcp.f32 %v792_v59 }
 0x331   : > { %v1298_v60 = vpop.eup %1297 }
 0x332   : > { %v795_v61 = vmul.f32 %v1298_v60, %v1294_v54 }
 0x334   : > { %1167 = vmatmul.mubr.msk.f32.vlgmr.msra.gmra.mxu0 %vm797_vm5, %v795_v61 }
 0x335   : > { %v1300_v63 = vpop.eup %1299  ;;  %1170 = vmatpush3.msra.mxu0 %v624_v62  ;;  %1171 = vmatprep.mubr.msk.f32.mxu0 %vm1476_vm0, %v1475_v0 }
 0x336   : > { %v796_v1 = vmul.f32 %v1300_v63, %v1296_v56 }
 0x338   : > { %1172 = vmatmul.mubr.msk.f32.vlgmr.msra.gmra.mxu0 %vm797_vm5, %v796_v1 }
 0x3f4   : > { %v867_v2 = vpop.f32.mrf.mxu0 }
 0x3f5   : > { %v951_v8 = vadd.f32 %v1135_v4, %v867_v2 }
 0x3f6   : > { %v1168_v3 = vpop.f32.mrf.mxu0 }
 0x3f8   : > { %v940_v5 = vpop.f32.mrf.mxu0 }
 0x3f9   : > { %v952_v6 = vadd.f32 %v1135_v4, %v940_v5 }
 0x3fa   : > { %v1173_v7 = vpop.f32.mrf.mxu0 }
 0x3fb   : > { %v955_v9 = vrot.slane %v952_v6, 7 }
 0x3fd   : > { %v957_v10 = vsel %vm956_vm6, %v955_v9, %v951_v8 }
 0x3fe   : > { %959 = vst [vmem:[%s366_s15] sm:$0x3] %v957_v10 }
 0x3ff PF: > { %s23_s8 = sadd.s32 1, %s1465_s8   ;;  %s1725_s26 = smov %s1449_s27 }
 0x400   : > { %p20_p1 = scmp.ge.s32.totalorder %s23_s8, 7   ;;  %s1726_s27 = smov %s1453_s28 }
 0x401   : > { %s1727_s28 = smov %s1622_s18  ;;  %s1728_s29 = smov %s1461_s30 }
 0x402   : > { %s1729_s30 = smov %s1731_s19  ;;  %22 = sbr.rel (!%p20_p1) target bundleno = 8 (0x8), region = 99 }
 0x407   :  { %987 = vsyncpa [#allocation5], 1 }
 0x408   :  { %989 = vsyncpa [#allocation5 + $0x1], 1 }
 0x409   :  { %990 = vsyncpa [#allocation7], 1 }
 0x40a   :  { %991 = vsyncpa [#allocation10], 1 }

</bundles_post_ra>
